<compile_context>
chip_gen: v7x
topology: tpu7x:2x2x1
jax: 0.10.0
libtpu: 0.0.40
codegen_flags: <defaults>
</compile_context>

<pallas_src>
import numpy as np
import jax
import jax.numpy as jnp
from jax.experimental import pallas as pl
from jax.experimental.pallas import tpu as pltpu


_TILE_CAP = 1024          # per review: 512-1024 is the roofline sweet spot
_SUBLANE = 16             # bf16 sublane packing; also satisfies f32's 8
_TOEPLITZ_BUDGET = 16 * 1024 * 1024   # bytes, resident-weight budget (bf16)


# ------------------------------- fused kernel -------------------------------

def _fused_obs_kernel(x_ref, meta_ref,
                      wc_ref, bc_ref,            # conv-as-Toeplitz matmul (bf16 / f32)
                      wm_ref, bm_ref,            # meta Linear              (bf16 / f32)
                      w1g_ref, w1m_ref, b1_ref,  # shared layer 1 (concat folded)
                      w2_ref, b2_ref,            # shared layer 2
                      o_ref):
    f32 = jnp.float32
    bf16 = jnp.bfloat16
    # ObservationEncoder: 3x3 conv + ReLU as one bf16 matmul, f32 accumulate.
    g = jnp.dot(x_ref[...], wc_ref[...], preferred_element_type=f32)
    g = jnp.maximum(g + bc_ref[...], 0.0)          # (TN, COUT*H*W) f32, lane-dense
    # ObservationEncoder: meta Linear + ReLU.
    m = jnp.dot(meta_ref[...], wm_ref[...], preferred_element_type=f32)
    m = jnp.maximum(m + bm_ref[...], 0.0)          # (TN, META_HIDDEN) f32
    # FFNSharedEncoder: concat([flat_grid, meta]) @ w1 == g @ w1g + m @ w1m.
    h1 = (jnp.dot(g.astype(bf16), w1g_ref[...], preferred_element_type=f32)
          + jnp.dot(m.astype(bf16), w1m_ref[...], preferred_element_type=f32))
    h1 = jnp.maximum(h1 + b1_ref[...], 0.0)        # (TN, HIDDEN) f32
    h2 = jnp.dot(h1.astype(bf16), w2_ref[...], preferred_element_type=f32)
    o_ref[...] = jnp.maximum(h2 + b2_ref[...], 0.0).astype(o_ref.dtype)


# ------------------------- one-time weight repacking -------------------------

def _conv3x3_as_toeplitz(conv_w_oihw, h, w):
    """(COUT,CIN,3,3) torch conv weight -> (CIN*H*W, COUT*H*W) matmul weight.

    Row order is torch's NCHW flatten of the input; column order is torch's
    NCHW flatten of the conv output, so no activation permutation is needed.
    """
    wt = np.asarray(conv_w_oihw, dtype=np.float32)
    co, ci, kh_sz, kw_sz = wt.shape
    big = np.zeros((ci * h * w, co * h * w), np.float32)
    for ho in range(h):
        for wo in range(w):
            cols = np.arange(co) * (h * w) + ho * w + wo
            for kh in range(kh_sz):
                hi = ho + kh - 1
                if hi < 0 or hi >= h:
                    continue
                for kw in range(kw_sz):
                    wi = wo + kw - 1
                    if wi < 0 or wi >= w:
                        continue
                    rows = np.arange(ci) * (h * w) + hi * w + wi
                    big[np.ix_(rows, cols)] = wt[:, :, kh, kw].T   # (CIN, COUT)
    return big


def pack_params(tp, *, h, w):
    """Convert torch-layout params to the fused-kernel layout (call once)."""
    cout = tp["conv_b"].shape[0]
    flat_dim = cout * h * w
    big = _conv3x3_as_toeplitz(tp["conv_w"], h, w)     # (CIN*H*W, COUT*H*W) f32
    # Gate the Toeplitz path by resident-weight size (quadratic in H*W; would
    # blow v7x's 64 MiB VMEM long before v5e/v6e's 128 MiB).
    assert big.size * 2 <= _TOEPLITZ_BUDGET, (
        "Toeplitz conv weight too large for resident VMEM; "
        "use a tap-matmul formulation for large grids")
    # TODO(synk): tap-matmul / column-tiled fallback for large H*W grids.
    w1 = jnp.asarray(tp["ffn_w1"]).T                   # (flat_dim+meta_hidden, hidden)
    bf16 = jnp.bfloat16
    return {
        "wc": jnp.asarray(big, dtype=bf16),            # (CIN*H*W, COUT*H*W) bf16
        "bc": jnp.repeat(jnp.asarray(tp["conv_b"], jnp.float32), h * w).reshape(1, -1),
        "wm": jnp.asarray(tp["meta_w"]).T.astype(bf16),          # (meta_dim, meta_hidden)
        "bm": jnp.asarray(tp["meta_b"], jnp.float32).reshape(1, -1),
        "w1g": w1[:flat_dim].astype(bf16),              # grid rows of ffn_w1
        "w1m": w1[flat_dim:].astype(bf16),              # meta rows of ffn_w1
        "b1": jnp.asarray(tp["ffn_b1"], jnp.float32).reshape(1, -1),
        "w2": jnp.asarray(tp["ffn_w2"]).T.astype(bf16),
        "b2": jnp.asarray(tp["ffn_b2"], jnp.float32).reshape(1, -1),
    }


# ------------------------------ forward wrapper ------------------------------

def _round_up(x, m):
    return (x + m - 1) // m * m


def _run_tiles(x_bf, meta_bf, kp, tile_n):
    """One fused pallas_call over `rows` (a multiple of tile_n) samples."""
    rows, flat_in = x_bf.shape
    meta_dim = meta_bf.shape[1]
    hidden = kp["w2"].shape[1]
    num_tiles = rows // tile_n

    def batch_spec(d):
        return pl.BlockSpec((tile_n, d), lambda i: (i, 0))

    def const_spec(arr):
        return pl.BlockSpec(arr.shape, lambda i: (0, 0))   # resident weights

    return pl.pallas_call(
        _fused_obs_kernel,
        out_shape=jax.ShapeDtypeStruct((rows, hidden), jnp.float32),
        grid_spec=pltpu.PrefetchScalarGridSpec(
            num_scalar_prefetch=0,
            grid=(num_tiles,),
            in_specs=[
                batch_spec(flat_in), batch_spec(meta_dim),
                const_spec(kp["wc"]), const_spec(kp["bc"]),
                const_spec(kp["wm"]), const_spec(kp["bm"]),
                const_spec(kp["w1g"]), const_spec(kp["w1m"]), const_spec(kp["b1"]),
                const_spec(kp["w2"]), const_spec(kp["b2"]),
            ],
            out_specs=pl.BlockSpec((tile_n, hidden), lambda i: (i, 0)),
        ),
        compiler_params=pltpu.CompilerParams(
            dimension_semantics=("parallel",),        # shards batch tiles on v7x
            # Explicitly raised scoped-VMEM limit; working set at TN=1024 is
            # ~6-8 MB (bf16 operands) so this leaves ample headroom even on
            # v7x's 64 MiB physical VMEM.
            vmem_limit_bytes=32 * 1024 * 1024,
        ),
    )(x_bf, meta_bf, kp["wc"], kp["bc"], kp["wm"], kp["bm"],
      kp["w1g"], kp["w1m"], kp["b1"], kp["w2"], kp["b2"])


def observation_shared_wrapper(grid_obs_nchw, meta_obs, kp, *, tile_n=None):
    """batched_obs = (grid NCHW, meta flat) -> shared hidden h (fused kernel)."""
    n = grid_obs_nchw.shape[0]
    bf16 = jnp.bfloat16
    x_flat = grid_obs_nchw.reshape(n, -1).astype(bf16)   # free NCHW flatten
    meta = meta_obs.astype(bf16)

    if tile_n is None:
        # ~n/4 per tile (>=4 grid tiles for large n so the parallel batch axis
        # spans v7x's 2 TensorCores), capped at the roofline-optimal tile and
        # floored/aligned to the bf16 sublane pack.
        tile_n = min(_TILE_CAP, _round_up(max(-(-n // 4), 1), _SUBLANE))
    tile_n = max(_SUBLANE, _round_up(int(tile_n), _SUBLANE))

    num_full = n // tile_n
    rem = n - num_full * tile_n
    outs = []
    if num_full > 0:
        # Bulk batch: exact tiles, no padding copy of the big input.
        bulk = num_full * tile_n
        outs.append(_run_tiles(x_flat[:bulk], meta[:bulk], kp, tile_n))
    if rem > 0:
        # Ragged tail: pad only the <tile_n leftover rows.
        start = num_full * tile_n
        rt = _round_up(rem, _SUBLANE)
        xr = jnp.pad(x_flat[start:], ((0, rt - rem), (0, 0)))
        mr = jnp.pad(meta[start:], ((0, rt - rem), (0, 0)))
        outs.append(_run_tiles(xr, mr, kp, rt)[:rem])
    return outs[0] if len(outs) == 1 else jnp.concatenate(outs, axis=0)


# ----------------------- torch-layout params + reference ---------------------

def init_torch_params(key, *, cin, cout, h, w, meta_dim, meta_hidden, hidden):
    ks = jax.random.split(key, 8)
    s = 0.05
    flat_dim = cout * h * w
    return {
        "conv_w": s * jax.random.normal(ks[0], (cout, cin, 3, 3), jnp.float32),  # OIHW
        "conv_b": s * jax.random.normal(ks[1], (cout,), jnp.float32),
        "meta_w": s * jax.random.normal(ks[2], (meta_hidden, meta_dim), jnp.float32),
        "meta_b": s * jax.random.normal(ks[3], (meta_hidden,), jnp.float32),
        "ffn_w1": s * jax.random.normal(ks[4], (hidden, flat_dim + meta_hidden), jnp.float32),
        "ffn_b1": s * jax.random.normal(ks[5], (hidden,), jnp.float32),
        "ffn_w2": s * jax.random.normal(ks[6], (hidden, hidden), jnp.float32),
        "ffn_b2": s * jax.random.normal(ks[7], (hidden,), jnp.float32),
    }


def reference_forward(grid_obs, meta_obs, tp):
    """Plain-JAX replica of the PyTorch forward (NCHW conv, torch flatten)."""
    y = jax.lax.conv_general_dilated(
        grid_obs, tp["conv_w"], window_strides=(1, 1), padding="SAME",
        dimension_numbers=("NCHW", "OIHW", "NCHW"))
    y = jax.nn.relu(y + tp["conv_b"][None, :, None, None])
    flat = y.reshape(grid_obs.shape[0], -1)
    m = jax.nn.relu(meta_obs @ tp["meta_w"].T + tp["meta_b"])
    cat = jnp.concatenate([flat, m], axis=-1)
    h1 = jax.nn.relu(cat @ tp["ffn_w1"].T + tp["ffn_b1"])
    return jax.nn.relu(h1 @ tp["ffn_w2"].T + tp["ffn_b2"])


# ----------------------------------- driver ----------------------------------

if __name__ == "__main__":
    N, CIN, H, W = 2, 4, 8, 8
    COUT, META_DIM, META_HIDDEN, HIDDEN = 8, 8, 16, 32

    key = jax.random.PRNGKey(0)
    k_grid, k_meta, k_params = jax.random.split(key, 3)
    grid_obs = jax.random.normal(k_grid, (N, CIN, H, W), jnp.float32)   # NCHW
    meta_obs = jax.random.normal(k_meta, (N, META_DIM), jnp.float32)

    torch_params = init_torch_params(
        k_params, cin=CIN, cout=COUT, h=H, w=W,
        meta_dim=META_DIM, meta_hidden=META_HIDDEN, hidden=HIDDEN)
    packed = pack_params(torch_params, h=H, w=W)        # one-time repack

    fwd = jax.jit(observation_shared_wrapper)
    out = jax.block_until_ready(fwd(grid_obs, meta_obs, packed))
    assert out.shape == (N, HIDDEN), out.shape
    assert bool(jnp.all(jnp.isfinite(out)))

    ref = reference_forward(grid_obs, meta_obs, torch_params)
    max_err = float(jnp.max(jnp.abs(out - ref)))
    assert bool(jnp.allclose(out, ref, rtol=1e-2, atol=1e-2)), max_err

    print("KERNEL_OK")
</pallas_src>

<mosaic_0001>
module attributes {stable_mosaic.version = 11 : i64} {
  func.func @_fused_obs_kernel(%arg0: i32, %arg1: memref<16x256xbf16, #tpu.memory_space<vmem>>, %arg2: memref<16x8xbf16, #tpu.memory_space<vmem>>, %arg3: memref<256x512xbf16, #tpu.memory_space<vmem>>, %arg4: memref<1x512xf32, #tpu.memory_space<vmem>>, %arg5: memref<8x16xbf16, #tpu.memory_space<vmem>>, %arg6: memref<1x16xf32, #tpu.memory_space<vmem>>, %arg7: memref<512x32xbf16, #tpu.memory_space<vmem>>, %arg8: memref<16x32xbf16, #tpu.memory_space<vmem>>, %arg9: memref<1x32xf32, #tpu.memory_space<vmem>>, %arg10: memref<32x32xbf16, #tpu.memory_space<vmem>>, %arg11: memref<1x32xf32, #tpu.memory_space<vmem>>, %arg12: memref<16x32xf32, #tpu.memory_space<vmem>>) attributes {dimension_semantics = [#tpu.dimension_semantics<parallel>], iteration_bounds = array<i64: 1>, scalar_prefetch = 0 : i64, scratch_operands = 0 : i64, tpu.core_type = #tpu.core_type<tc>, window_params = [{transform_indices = @transform_0, window_bounds = array<i64: 16, 256>}, {transform_indices = @transform_1, window_bounds = array<i64: 16, 8>}, {pipeline_mode = #tpu.pipeline_mode<synchronous>, transform_indices = @transform_2, window_bounds = array<i64: 256, 512>}, {pipeline_mode = #tpu.pipeline_mode<synchronous>, transform_indices = @transform_3, window_bounds = array<i64: 1, 512>}, {pipeline_mode = #tpu.pipeline_mode<synchronous>, transform_indices = @transform_4, window_bounds = array<i64: 8, 16>}, {pipeline_mode = #tpu.pipeline_mode<synchronous>, transform_indices = @transform_5, window_bounds = array<i64: 1, 16>}, {pipeline_mode = #tpu.pipeline_mode<synchronous>, transform_indices = @transform_6, window_bounds = array<i64: 512, 32>}, {pipeline_mode = #tpu.pipeline_mode<synchronous>, transform_indices = @transform_7, window_bounds = array<i64: 16, 32>}, {pipeline_mode = #tpu.pipeline_mode<synchronous>, transform_indices = @transform_8, window_bounds = array<i64: 1, 32>}, {pipeline_mode = #tpu.pipeline_mode<synchronous>, transform_indices = @transform_9, window_bounds = array<i64: 32, 32>}, {pipeline_mode = #tpu.pipeline_mode<synchronous>, transform_indices = @transform_10, window_bounds = array<i64: 1, 32>}, {transform_indices = @transform_11, window_bounds = array<i64: 16, 32>}]} {
    %c0 = arith.constant 0 : index
    %c0_0 = arith.constant 0 : index
    %0 = vector.load %arg1[%c0, %c0_0] : memref<16x256xbf16, #tpu.memory_space<vmem>>, vector<16x256xbf16>
    %c0_1 = arith.constant 0 : index
    %c0_2 = arith.constant 0 : index
    %1 = vector.load %arg3[%c0_1, %c0_2] : memref<256x512xbf16, #tpu.memory_space<vmem>>, vector<256x512xbf16>
    %cst = arith.constant dense<0.000000e+00> : vector<16x512xf32>
    %2 = tpu.matmul %0, %1, %cst {dimension_numbers = #tpu.dot_dimension_numbers<[1], [0], [0], [1], [0, 0, 1, 1], [], []>} : vector<16x256xbf16>, vector<256x512xbf16>, vector<16x512xf32> -> vector<16x512xf32>
    %c0_3 = arith.constant 0 : index
    %c0_4 = arith.constant 0 : index
    %3 = vector.load %arg4[%c0_3, %c0_4] : memref<1x512xf32, #tpu.memory_space<vmem>>, vector<1x512xf32>
    %4 = vector.broadcast %3 : vector<1x512xf32> to vector<16x512xf32>
    %5 = arith.addf %2, %4 : vector<16x512xf32>
    %cst_5 = arith.constant 0.000000e+00 : f32
    %6 = vector.broadcast %cst_5 : f32 to vector<16x512xf32>
    %7 = arith.maximumf %5, %6 : vector<16x512xf32>
    %c0_6 = arith.constant 0 : index
    %c0_7 = arith.constant 0 : index
    %8 = vector.load %arg2[%c0_6, %c0_7] : memref<16x8xbf16, #tpu.memory_space<vmem>>, vector<16x8xbf16>
    %c0_8 = arith.constant 0 : index
    %c0_9 = arith.constant 0 : index
    %9 = vector.load %arg5[%c0_8, %c0_9] : memref<8x16xbf16, #tpu.memory_space<vmem>>, vector<8x16xbf16>
    %cst_10 = arith.constant dense<0.000000e+00> : vector<16x16xf32>
    %10 = tpu.matmul %8, %9, %cst_10 {dimension_numbers = #tpu.dot_dimension_numbers<[1], [0], [0], [1], [0, 0, 1, 1], [], []>} : vector<16x8xbf16>, vector<8x16xbf16>, vector<16x16xf32> -> vector<16x16xf32>
    %c0_11 = arith.constant 0 : index
    %c0_12 = arith.constant 0 : index
    %11 = vector.load %arg6[%c0_11, %c0_12] : memref<1x16xf32, #tpu.memory_space<vmem>>, vector<1x16xf32>
    %12 = vector.broadcast %11 : vector<1x16xf32> to vector<16x16xf32>
    %13 = arith.addf %10, %12 : vector<16x16xf32>
    %cst_13 = arith.constant 0.000000e+00 : f32
    %14 = vector.broadcast %cst_13 : f32 to vector<16x16xf32>
    %15 = arith.maximumf %13, %14 : vector<16x16xf32>
    %16 = arith.truncf %7 : vector<16x512xf32> to vector<16x512xbf16>
    %c0_14 = arith.constant 0 : index
    %c0_15 = arith.constant 0 : index
    %17 = vector.load %arg7[%c0_14, %c0_15] : memref<512x32xbf16, #tpu.memory_space<vmem>>, vector<512x32xbf16>
    %cst_16 = arith.constant dense<0.000000e+00> : vector<16x32xf32>
    %18 = tpu.matmul %16, %17, %cst_16 {dimension_numbers = #tpu.dot_dimension_numbers<[1], [0], [0], [1], [0, 0, 1, 1], [], []>} : vector<16x512xbf16>, vector<512x32xbf16>, vector<16x32xf32> -> vector<16x32xf32>
    %19 = arith.truncf %15 : vector<16x16xf32> to vector<16x16xbf16>
    %c0_17 = arith.constant 0 : index
    %c0_18 = arith.constant 0 : index
    %20 = vector.load %arg8[%c0_17, %c0_18] : memref<16x32xbf16, #tpu.memory_space<vmem>>, vector<16x32xbf16>
    %cst_19 = arith.constant dense<0.000000e+00> : vector<16x32xf32>
    %21 = tpu.matmul %19, %20, %cst_19 {dimension_numbers = #tpu.dot_dimension_numbers<[1], [0], [0], [1], [0, 0, 1, 1], [], []>} : vector<16x16xbf16>, vector<16x32xbf16>, vector<16x32xf32> -> vector<16x32xf32>
    %22 = arith.addf %18, %21 : vector<16x32xf32>
    %c0_20 = arith.constant 0 : index
    %c0_21 = arith.constant 0 : index
    %23 = vector.load %arg9[%c0_20, %c0_21] : memref<1x32xf32, #tpu.memory_space<vmem>>, vector<1x32xf32>
    %24 = vector.broadcast %23 : vector<1x32xf32> to vector<16x32xf32>
    %25 = arith.addf %22, %24 : vector<16x32xf32>
    %cst_22 = arith.constant 0.000000e+00 : f32
    %26 = vector.broadcast %cst_22 : f32 to vector<16x32xf32>
    %27 = arith.maximumf %25, %26 : vector<16x32xf32>
    %28 = arith.truncf %27 : vector<16x32xf32> to vector<16x32xbf16>
    %c0_23 = arith.constant 0 : index
    %c0_24 = arith.constant 0 : index
    %29 = vector.load %arg10[%c0_23, %c0_24] : memref<32x32xbf16, #tpu.memory_space<vmem>>, vector<32x32xbf16>
    %cst_25 = arith.constant dense<0.000000e+00> : vector<16x32xf32>
    %30 = tpu.matmul %28, %29, %cst_25 {dimension_numbers = #tpu.dot_dimension_numbers<[1], [0], [0], [1], [0, 0, 1, 1], [], []>} : vector<16x32xbf16>, vector<32x32xbf16>, vector<16x32xf32> -> vector<16x32xf32>
    %c0_26 = arith.constant 0 : index
    %c0_27 = arith.constant 0 : index
    %31 = vector.load %arg11[%c0_26, %c0_27] : memref<1x32xf32, #tpu.memory_space<vmem>>, vector<1x32xf32>
    %32 = vector.broadcast %31 : vector<1x32xf32> to vector<16x32xf32>
    %33 = arith.addf %30, %32 : vector<16x32xf32>
    %cst_28 = arith.constant 0.000000e+00 : f32
    %34 = vector.broadcast %cst_28 : f32 to vector<16x32xf32>
    %35 = arith.maximumf %33, %34 : vector<16x32xf32>
    %c0_29 = arith.constant 0 : index
    %c0_30 = arith.constant 0 : index
    %36 = vector.load %arg12[%c0_29, %c0_30] : memref<16x32xf32, #tpu.memory_space<vmem>>, vector<16x32xf32>
    tpu.vector_store %arg12[%c0_29, %c0_30], %35 {strides = array<i32>} : memref<16x32xf32, #tpu.memory_space<vmem>>, vector<16x32xf32>,
    return
  }
  func.func @transform_0(%arg0: i32) -> (i32, i32) {
    %c0_i32 = arith.constant 0 : i32
    %c0_i32_0 = arith.constant 0 : i32
    return %arg0, %c0_i32 : i32, i32
  }
  func.func @transform_1(%arg0: i32) -> (i32, i32) {
    %c0_i32 = arith.constant 0 : i32
    %c0_i32_0 = arith.constant 0 : i32
    return %arg0, %c0_i32 : i32, i32
  }
  func.func @transform_2(%arg0: i32) -> (i32, i32) {
    %c0_i32 = arith.constant 0 : i32
    %c0_i32_0 = arith.constant 0 : i32
    %c0_i32_1 = arith.constant 0 : i32
    return %c0_i32, %c0_i32_0 : i32, i32
  }
  func.func @transform_3(%arg0: i32) -> (i32, i32) {
    %c0_i32 = arith.constant 0 : i32
    %c0_i32_0 = arith.constant 0 : i32
    %c0_i32_1 = arith.constant 0 : i32
    return %c0_i32, %c0_i32_0 : i32, i32
  }
  func.func @transform_4(%arg0: i32) -> (i32, i32) {
    %c0_i32 = arith.constant 0 : i32
    %c0_i32_0 = arith.constant 0 : i32
    %c0_i32_1 = arith.constant 0 : i32
    return %c0_i32, %c0_i32_0 : i32, i32
  }
  func.func @transform_5(%arg0: i32) -> (i32, i32) {
    %c0_i32 = arith.constant 0 : i32
    %c0_i32_0 = arith.constant 0 : i32
    %c0_i32_1 = arith.constant 0 : i32
    return %c0_i32, %c0_i32_0 : i32, i32
  }
  func.func @transform_6(%arg0: i32) -> (i32, i32) {
    %c0_i32 = arith.constant 0 : i32
    %c0_i32_0 = arith.constant 0 : i32
    %c0_i32_1 = arith.constant 0 : i32
    return %c0_i32, %c0_i32_0 : i32, i32
  }
  func.func @transform_7(%arg0: i32) -> (i32, i32) {
    %c0_i32 = arith.constant 0 : i32
    %c0_i32_0 = arith.constant 0 : i32
    %c0_i32_1 = arith.constant 0 : i32
    return %c0_i32, %c0_i32_0 : i32, i32
  }
  func.func @transform_8(%arg0: i32) -> (i32, i32) {
    %c0_i32 = arith.constant 0 : i32
    %c0_i32_0 = arith.constant 0 : i32
    %c0_i32_1 = arith.constant 0 : i32
    return %c0_i32, %c0_i32_0 : i32, i32
  }
  func.func @transform_9(%arg0: i32) -> (i32, i32) {
    %c0_i32 = arith.constant 0 : i32
    %c0_i32_0 = arith.constant 0 : i32
    %c0_i32_1 = arith.constant 0 : i32
    return %c0_i32, %c0_i32_0 : i32, i32
  }
  func.func @transform_10(%arg0: i32) -> (i32, i32) {
    %c0_i32 = arith.constant 0 : i32
    %c0_i32_0 = arith.constant 0 : i32
    %c0_i32_1 = arith.constant 0 : i32
    return %c0_i32, %c0_i32_0 : i32, i32
  }
  func.func @transform_11(%arg0: i32) -> (i32, i32) {
    %c0_i32 = arith.constant 0 : i32
    %c0_i32_0 = arith.constant 0 : i32
    return %arg0, %c0_i32 : i32, i32
  }
}

</mosaic_0001>

<bundles_post_ra>
// kernel: observation_shared_wrapper.1
= control target key start
LH: loop header
LB: loop body
LE: loop exit
PB: predicated region body
PF: predicated region fallthrough
CT: control target
= control target key end

     0   :  { %16 = vsyncpa [#allocation3], 0  ;;  %s2110_s0 = inlined_call_operand.vmem [shape: bf16[16,256], index: 0, kind: input, shape index: {}]   ;;  %s2111_s1 = inlined_call_operand.vmem [shape: bf16[16,8], index: 1, kind: input, shape index: {}]   ;;  %s2112_s2 = inlined_call_operand.vmem [shape: bf16[256,512], index: 2, kind: input, shape index: {}]   ;;  %s2113_s3 = inlined_call_operand.vmem [shape: f32[1,512], index: 3, kind: input, shape index: {}]   ;;  %s2114_s4 = inlined_call_operand.hbm [shape: bf16[8,16], index: 4, kind: input, shape index: {}]   ;;  %s2115_s5 = inlined_call_operand.hbm [shape: f32[1,16], index: 5, kind: input, shape index: {}]   ;;  %s2116_s6 = inlined_call_operand.vmem [shape: bf16[512,32], index: 6, kind: input, shape index: {}]   ;;  %s2117_s7 = inlined_call_operand.hbm [shape: bf16[16,32], index: 7, kind: input, shape index: {}]   ;;  %s2118_s8 = inlined_call_operand.hbm [shape: f32[1,32], index: 8, kind: input, shape index: {}]   ;;  %s2119_s9 = inlined_call_operand.hbm [shape: bf16[32,32], index: 9, kind: input, shape index: {}]   ;;  %s2120_s10 = inlined_call_operand.hbm [shape: f32[1,32], index: 10, kind: input, shape index: {}]   ;;  %s2121_s11 = inlined_call_operand.vmem [shape: f32[16,32], index: 11, kind: output, shape index: {}]  }
   0x1   :  { %17 = vsyncpa [#allocation5], 0 }
   0x2   :  { %18 = vsyncpa [#allocation8], 0 }
   0x3   :  { %19 = vsyncpa [#allocation11], 0  ;;  %s1643_s17 = smov [#allocation4]   ;;  %s1644_s19 = smov [#allocation7]  }
   0x4   :  { %s44_s18 = sshll.u32 %s1643_s17, 4  ;;  %s68_s20 = sshll.u32 %s1644_s19, 4  ;;  %s45_s18 = int_to_ptr.vmem [resolvable:$true] %s44_s18  ;;  %s69_s20 = int_to_ptr.vmem [resolvable:$true] %s68_s20 }
   0x5   :  { %s1503_s23 = scalar_lea.hbm %s2115_s5, 16 }
   0x6   :  { %p1504_p0 = scmp.ne.s32.totalorder %s2115_s5, %s1503_s23  ;;  %p1507_p1 = scmp.lt.u32.totalorder %s1503_s23, %s2115_s5 }
   0x8   :  { %p1509_p2 = pnand %p1507_p1, %p1504_p0 }
   0xa   :  { %1512 = shalt.err (!%p1509_p2)
}
   0xb   :  { %s1513_s28 = scalar_lea.vmem %s45_s18, 16  ;;  %s1517_s29 = scalar_lea.vmem %s45_s18, 32 }
   0xc   :  { %p1514_p3 = scmp.ne.s32.totalorder %s45_s18, %s1513_s28  ;;  %p1518_p4 = scmp.lt.s32.totalorder %s45_s18, %s45_s18 }
   0xd   :  { %p1519_p5 = scmp.lt.s32.totalorder %s1517_s29, %s1513_s28 }
   0xf   :  { %p1520_p6 = por %p1519_p5, %p1518_p4 }
  0x11   :  { %p1521_p7 = pnand %p1520_p6, %p1514_p3 }
  0x13   :  { %1524 = shalt.err (!%p1521_p7)
}
  0x14   :  { %47 = dma.hbm_to_vmem [thread:$0]  %s2115_s5, 16, %s45_s18, [#allocation5]  }
  0x15   :  { %s1525_s15 = scalar_lea.hbm %s2118_s8, 16 }
  0x16   :  { %p1526_p8 = scmp.ne.s32.totalorder %s2118_s8, %s1525_s15  ;;  %p1529_p9 = scmp.lt.u32.totalorder %s1525_s15, %s2118_s8 }
  0x18   :  { %p1531_p10 = pnand %p1529_p9, %p1526_p8 }
  0x1a   :  { %1534 = shalt.err (!%p1531_p10)
}
  0x1b   :  { %s1535_s22 = scalar_lea.vmem %s69_s20, 16  ;;  %s1539_s23 = scalar_lea.vmem %s69_s20, 32 }
  0x1c   :  { %p1536_p11 = scmp.ne.s32.totalorder %s69_s20, %s1535_s22  ;;  %p1540_p12 = scmp.lt.s32.totalorder %s69_s20, %s69_s20 }
  0x1d   :  { %p1541_p13 = scmp.lt.s32.totalorder %s1539_s23, %s1535_s22 }
  0x1f   :  { %p1542_p0 = por %p1541_p13, %p1540_p12 }
  0x21   :  { %p1543_p1 = pnand %p1542_p0, %p1536_p11 }
  0x23   :  { %1546 = shalt.err (!%p1543_p1)
}
  0x24   :  { %71 = dma.hbm_to_vmem [thread:$0]  %s2118_s8, 16, %s69_s20, [#allocation8]  }
  0x25   :  { %s1645_s24 = smov [#allocation2]   ;;  %s1646_s26 = smov [#allocation6]  }
  0x26   :  { %s34_s25 = sshll.u32 %s1645_s24, 4  ;;  %s55_s27 = sshll.u32 %s1646_s26, 4  ;;  %s35_s25 = int_to_ptr.vmem [resolvable:$true] %s34_s25  ;;  %s1737_s27 = int_to_ptr.vmem [resolvable:$true] %s55_s27 }
  0x27   :  { %s1547_s30 = scalar_lea.hbm %s2114_s4, 64 }
  0x28   :  { %p1548_p2 = scmp.ne.s32.totalorder %s2114_s4, %s1547_s30  ;;  %p1551_p3 = scmp.lt.u32.totalorder %s1547_s30, %s2114_s4 }
  0x2a   :  { %p1553_p4 = pnand %p1551_p3, %p1548_p2 }
  0x2c   :  { %1556 = shalt.err (!%p1553_p4)
}
  0x2d   :  { %s1557_s8 = scalar_lea.vmem %s35_s25, 64  ;;  %p1562_p6 = scmp.lt.s32.totalorder %s35_s25, %s35_s25 }
  0x2e   :  { %p1558_p5 = scmp.ne.s32.totalorder %s35_s25, %s1557_s8  ;;  %p1563_p7 = scmp.lt.s32.totalorder %s1557_s8, %s1557_s8 }
  0x30   :  { %p1564_p8 = por %p1563_p7, %p1562_p6 }
  0x32   :  { %p1565_p9 = pnand %p1564_p8, %p1558_p5 }
  0x34   :  { %1568 = shalt.err (!%p1565_p9)
}
  0x35   :  { %37 = dma.hbm_to_vmem [thread:$0]  %s2114_s4, 64, %s35_s25, [#allocation3]  }
  0x36   :  { %s1569_s21 = scalar_lea.hbm %s2117_s7, 128 }
  0x37   :  { %p1570_p10 = scmp.ne.s32.totalorder %s2117_s7, %s1569_s21  ;;  %p1573_p11 = scmp.lt.u32.totalorder %s1569_s21, %s2117_s7 }
  0x39   :  { %p1575_p12 = pnand %p1573_p11, %p1570_p10 }
  0x3b   :  { %1578 = shalt.err (!%p1575_p12)
}
  0x3c   :  { %s1579_s24 = scalar_lea.vmem %s1737_s27, 128  ;;  %p1584_p0 = scmp.lt.s32.totalorder %s1737_s27, %s1737_s27 }
  0x3d   :  { %p1580_p13 = scmp.ne.s32.totalorder %s1737_s27, %s1579_s24  ;;  %p1585_p1 = scmp.lt.s32.totalorder %s1579_s24, %s1579_s24 }
  0x3f   :  { %p1586_p2 = por %p1585_p1, %p1584_p0 }
  0x41   :  { %p1587_p3 = pnand %p1586_p2, %p1580_p13 }
  0x43   :  { %1590 = shalt.err (!%p1587_p3)
}
  0x44   :  { %s1647_s4 = smov 64   ;;  %s1648_s25 = smov 4  }
  0x45   :  { %61 = dma.hbm_to_vmem [thread:$0]  %s2117_s7, 128, %s1737_s27, [#allocation5], %s1647_s4, %s1647_s4, %s1648_s25  }
  0x46   :  { %s1649_s29 = smov [#allocation9]   ;;  %s1650_s12 = smov [#allocation10]  }
  0x47   :  { %s77_s30 = sshll.u32 %s1649_s29, 4  ;;  %s90_s13 = sshll.u32 %s1650_s12, 4  ;;  %s78_s30 = int_to_ptr.vmem [resolvable:$true] %s77_s30  ;;  %s91_s13 = int_to_ptr.vmem [resolvable:$true] %s90_s13 }
  0x48   :  { %s1591_s8 = scalar_lea.hbm %s2119_s9, 256 }
  0x49   :  { %p1592_p4 = scmp.ne.s32.totalorder %s2119_s9, %s1591_s8  ;;  %p1595_p5 = scmp.lt.u32.totalorder %s1591_s8, %s2119_s9 }
  0x4b   :  { %p1597_p6 = pnand %p1595_p5, %p1592_p4 }
  0x4d   :  { %1600 = shalt.err (!%p1597_p6)
}
  0x4e   :  { %s1601_s7 = scalar_lea.vmem %s78_s30, 256  ;;  %p1606_p8 = scmp.lt.s32.totalorder %s78_s30, %s78_s30 }
  0x4f   :  { %p1602_p7 = scmp.ne.s32.totalorder %s78_s30, %s1601_s7  ;;  %p1607_p9 = scmp.lt.s32.totalorder %s1601_s7, %s1601_s7 }
  0x51   :  { %p1608_p10 = por %p1607_p9, %p1606_p8 }
  0x53   :  { %p1609_p11 = pnand %p1608_p10, %p1602_p7 }
  0x55   :  { %1612 = shalt.err (!%p1609_p11)
}
  0x56   :  { %83 = dma.hbm_to_vmem [thread:$0]  %s2119_s9, 256, %s78_s30, [#allocation8], %s1647_s4, %s1647_s4, %s1648_s25  }
  0x57   :  { %s1613_s5 = scalar_lea.hbm %s2120_s10, 16 }
  0x58   :  { %p1614_p12 = scmp.ne.s32.totalorder %s2120_s10, %s1613_s5  ;;  %p1617_p13 = scmp.lt.u32.totalorder %s1613_s5, %s2120_s10 }
  0x5a   :  { %p1619_p0 = pnand %p1617_p13, %p1614_p12 }
  0x5c   :  { %1622 = shalt.err (!%p1619_p0)
}
  0x5d   :  { %s1623_s29 = scalar_lea.vmem %s91_s13, 16  ;;  %s1627_s12 = scalar_lea.vmem %s91_s13, 32 }
  0x5e   :  { %p1624_p1 = scmp.ne.s32.totalorder %s91_s13, %s1623_s29  ;;  %p1628_p2 = scmp.lt.s32.totalorder %s91_s13, %s91_s13 }
  0x5f   :  { %p1629_p3 = scmp.lt.s32.totalorder %s1627_s12, %s1623_s29 }
  0x61   :  { %p1630_p4 = por %p1629_p3, %p1628_p2 }
  0x63   :  { %p1631_p5 = pnand %p1630_p4, %p1624_p1 }
  0x65   :  { %1634 = shalt.err (!%p1631_p5)
}
  0x66   :  { %93 = dma.hbm_to_vmem [thread:$0]  %s2120_s10, 16, %s91_s13, [#allocation11]  }
  0x67   :  { %1635 = dma.done.wait [#allocation3], 64  }
  0x68   :  { %1636 = vsyncadd [#allocation3], 4294967232 }
  0x69   :  { %1637 = dma.done.wait [#allocation5], 144  }
  0x6a   :  { %1638 = vsyncadd [#allocation5], 4294967152 }
  0x6b   :  { %1639 = dma.done.wait [#allocation8], 272  }
  0x6c   :  { %1640 = vsyncadd [#allocation8], 4294967024 }
  0x6d   :  { %1641 = dma.done.wait [#allocation11], 16  }
  0x6e   :  { %1642 = vsyncadd [#allocation11], 4294967280  ;;  %v1368_v0 = vld [vmem:[%s2112_s2 + $0x4] ss:$16 sps:$4 sm:$0xff]   ;;  %v1370_v1 = vld [vmem:[%s2112_s2] ss:$16 sps:$4 sm:$0xff]  }
  0x6f   :  { %531 = vmatprep.subr.bf16.mxu0 %v1368_v0  ;;  %v1371_v2 = vld [vmem:[%s2112_s2 + $0x24] ss:$16 sps:$4 sm:$0xff]   ;;  %v1373_v3 = vld [vmem:[%s2112_s2 + $0x20] ss:$16 sps:$4 sm:$0xff]   ;;  %v1395_v9 = vld [vmem:[%s2112_s2 + $0xc] ss:$16 sps:$4 sm:$0xff]  }
  0x70   :  { %532 = vmatpush1.bf16.msra.mxu0 %v1370_v1  ;;  %v1374_v4 = vld [vmem:[%s2112_s2 + $0x44] ss:$16 sps:$4 sm:$0xff]   ;;  %v1376_v5 = vld [vmem:[%s2112_s2 + $0x40] ss:$16 sps:$4 sm:$0xff]   ;;  %574 = vmatprep.subr.bf16.mxu1 %v1395_v9  ;;  %v1399_v11 = vld [vmem:[%s2112_s2 + $0x8] ss:$16 sps:$4 sm:$0xff]  }
  0x71   :  { %533 = vmatprep.subr.bf16.mxu0 %v1371_v2  ;;  %v1377_v6 = vld [vmem:[%s2112_s2 + $0x64] ss:$16 sps:$4 sm:$0xff]   ;;  %v1379_v7 = vld [vmem:[%s2112_s2 + $0x60] ss:$16 sps:$4 sm:$0xff]   ;;  %v1401_v12 = vld [vmem:[%s2112_s2 + $0x2c] ss:$16 sps:$4 sm:$0xff]   ;;  %575 = vmatpush1.bf16.msra.mxu1 %v1399_v11 }
  0x72   :  { %v1380_v8 = vld [vmem:[%s2112_s2 + $0x84] ss:$16 sps:$4 sm:$0xff]   ;;  %v1382_v10 = vld [vmem:[%s2112_s2 + $0x80] ss:$16 sps:$4 sm:$0xff]   ;;  %v1405_v14 = vld [vmem:[%s2112_s2 + $0x28] ss:$16 sps:$4 sm:$0xff]   ;;  %576 = vmatprep.subr.bf16.mxu1 %v1401_v12 }
  0x73   :  { %v1383_v13 = vld [vmem:[%s2112_s2 + $0xa4] ss:$16 sps:$4 sm:$0xff]   ;;  %v1407_v15 = vld [vmem:[%s2112_s2 + $0x4c] ss:$16 sps:$4 sm:$0xff]   ;;  %v1385_v16 = vld [vmem:[%s2112_s2 + $0xa0] ss:$16 sps:$4 sm:$0xff]  }
  0x74   :  { %534 = vmatpush1.bf16.msra.mxu0 %v1373_v3  ;;  %v1386_v17 = vld [vmem:[%s2112_s2 + $0xc4] ss:$16 sps:$4 sm:$0xff]   ;;  %v1411_v18 = vld [vmem:[%s2112_s2 + $0x48] ss:$16 sps:$4 sm:$0xff]   ;;  %v1413_v19 = vld [vmem:[%s2112_s2 + $0x6c] ss:$16 sps:$4 sm:$0xff]  }
  0x75   :  { %535 = vmatprep.subr.bf16.mxu0 %v1374_v4  ;;  %577 = vmatpush1.bf16.msra.mxu1 %v1405_v14  ;;  %v1388_v20 = vld [vmem:[%s2112_s2 + $0xc0] ss:$16 sps:$4 sm:$0xff]   ;;  %v1389_v21 = vld [vmem:[%s2112_s2 + $0xe4] ss:$16 sps:$4 sm:$0xff]   ;;  %v1417_v22 = vld [vmem:[%s2112_s2 + $0x68] ss:$16 sps:$4 sm:$0xff]  }
  0x76   :  { %578 = vmatprep.subr.bf16.mxu1 %v1407_v15  ;;  %v1419_v23 = vld [vmem:[%s2112_s2 + $0x8c] ss:$16 sps:$4 sm:$0xff]   ;;  %v1391_v24 = vld [vmem:[%s2112_s2 + $0xe0] ss:$16 sps:$4 sm:$0xff]   ;;  %v1392_v25 = vld [vmem:[%s2112_s2 + $0x104] ss:$16 sps:$4 sm:$0xff]  }
  0x77   :  { %v1423_v26 = vld [vmem:[%s2112_s2 + $0x88] ss:$16 sps:$4 sm:$0xff]   ;;  %v1425_v27 = vld [vmem:[%s2112_s2 + $0xac] ss:$16 sps:$4 sm:$0xff]   ;;  %v1394_v28 = vld [vmem:[%s2112_s2 + $0x100] ss:$16 sps:$4 sm:$0xff]  }
  0x78   :  { %536 = vmatpush1.bf16.msra.mxu0 %v1376_v5  ;;  %v1397_v29 = vld [vmem:[%s2112_s2 + $0x124] ss:$16 sps:$4 sm:$0xff]   ;;  %v1429_v31 = vld [vmem:[%s2112_s2 + $0xa8] ss:$16 sps:$4 sm:$0xff]   ;;  %v1431_v32 = vld [vmem:[%s2112_s2 + $0xcc] ss:$16 sps:$4 sm:$0xff]  }
  0x79   :  { %537 = vmatprep.subr.bf16.mxu0 %v1377_v6  ;;  %579 = vmatpush1.bf16.msra.mxu1 %v1411_v18  ;;  %v1439_v30 = vld [vmem:[%s2110_s0 + $0x4] ss:$8 sps:$4 sm:$0xff]   ;;  %v1400_v33 = vld [vmem:[%s2112_s2 + $0x120] ss:$16 sps:$4 sm:$0xff]   ;;  %v1435_v35 = vld [vmem:[%s2112_s2 + $0xc8] ss:$16 sps:$4 sm:$0xff]  }
  0x7a   :  { %580 = vmatprep.subr.bf16.mxu1 %v1413_v19  ;;  %563 = vmatprep.mubr.bf16.mxu0 %v1439_v30  ;;  %v1403_v34 = vld [vmem:[%s2112_s2 + $0x144] ss:$16 sps:$4 sm:$0xff]   ;;  %v1440_v36 = vld [vmem:[%s2112_s2 + $0xec] ss:$16 sps:$4 sm:$0xff]   ;;  %v1406_v37 = vld [vmem:[%s2112_s2 + $0x140] ss:$16 sps:$4 sm:$0xff]  }
  0x7b   :  { %606 = vmatprep.mubr.bf16.mxu1 %v1439_v30  ;;  %v1409_v38 = vld [vmem:[%s2112_s2 + $0x164] ss:$16 sps:$4 sm:$0xff]   ;;  %v1442_v39 = vld [vmem:[%s2112_s2 + $0xe8] ss:$16 sps:$4 sm:$0xff]   ;;  %v1443_v40 = vld [vmem:[%s2112_s2 + $0x10c] ss:$16 sps:$4 sm:$0xff]  }
  0x7c   :  { %538 = vmatpush1.bf16.msra.mxu0 %v1379_v7  ;;  %v1412_v41 = vld [vmem:[%s2112_s2 + $0x160] ss:$16 sps:$4 sm:$0xff]   ;;  %v1415_v42 = vld [vmem:[%s2112_s2 + $0x184] ss:$16 sps:$4 sm:$0xff]   ;;  %vm644_vm0 = vcmask 1043456   ;;  %vm640_vm1 = vcmask 64512  }
  0x7d   :  { %539 = vmatprep.subr.bf16.mxu0 %v1380_v8  ;;  %581 = vmatpush1.bf16.msra.mxu1 %v1417_v22  ;;  %v1445_v43 = vld [vmem:[%s2112_s2 + $0x108] ss:$16 sps:$4 sm:$0xff]   ;;  %v1446_v44 = vld [vmem:[%s2112_s2 + $0x12c] ss:$16 sps:$4 sm:$0xff]   ;;  %v1418_v45 = vld [vmem:[%s2112_s2 + $0x180] ss:$16 sps:$4 sm:$0xff]  }
  0x7e   :  { %582 = vmatprep.subr.bf16.mxu1 %v1419_v23  ;;  %v1421_v46 = vld [vmem:[%s2112_s2 + $0x1a4] ss:$16 sps:$4 sm:$0xff]   ;;  %v1448_v47 = vld [vmem:[%s2112_s2 + $0x128] ss:$16 sps:$4 sm:$0xff]   ;;  %v1424_v48 = vld [vmem:[%s2112_s2 + $0x1a0] ss:$16 sps:$4 sm:$0xff]  }
  0x7f   :  { %v1450_v49 = vld [vmem:[%s2112_s2 + $0x14c] ss:$16 sps:$4 sm:$0xff]   ;;  %v1427_v50 = vld [vmem:[%s2112_s2 + $0x1c4] ss:$16 sps:$4 sm:$0xff]   ;;  %v627_v51 = vld [vmem:[#allocation2] sm:$0xf] }
  0x80   :  { %540 = vmatpush1.bf16.msra.mxu0 %v1382_v10  ;;  %v1452_v52 = vld [vmem:[%s2112_s2 + $0x148] ss:$16 sps:$4 sm:$0xff]   ;;  %v1430_v53 = vld [vmem:[%s2112_s2 + $0x1c0] ss:$16 sps:$4 sm:$0xff]   ;;  %v1453_v54 = vld [vmem:[%s2112_s2 + $0x16c] ss:$16 sps:$4 sm:$0xff]  }
  0x81   :  { %541 = vmatprep.subr.bf16.mxu0 %v1383_v13  ;;  %583 = vmatpush1.bf16.msra.mxu1 %v1423_v26  ;;  %v1433_v55 = vld [vmem:[%s2112_s2 + $0x1e4] ss:$16 sps:$4 sm:$0xff]   ;;  %v646_v56 = vsel %vm644_vm0, %v627_v51, 0  ;;  %v1455_v57 = vld [vmem:[%s2112_s2 + $0x168] ss:$16 sps:$4 sm:$0xff]   ;;  %v1651_v2 = vmov 0.0  }
  0x82   :  { %584 = vmatprep.subr.bf16.mxu1 %v1425_v27  ;;  %v1456_v58 = vld [vmem:[%s2112_s2 + $0x18c] ss:$16 sps:$4 sm:$0xff]   ;;  %v1436_v59 = vld [vmem:[%s2112_s2 + $0x1e0] ss:$16 sps:$4 sm:$0xff]   ;;  %v1458_v60 = vld [vmem:[%s2112_s2 + $0x188] ss:$16 sps:$4 sm:$0xff]  }
  0x83   :  { %v1459_v61 = vld [vmem:[%s2112_s2 + $0x1ac] ss:$16 sps:$4 sm:$0xff]   ;;  %v1437_v62 = vld [vmem:[%s2110_s0] ss:$8 sps:$4 sm:$0xff]   ;;  %vm1652_vm2 = vmmov 0   ;;  %v1472_v10 = vld [vmem:[%s2116_s6 + $0x50] sm:$0xff]  }
  0x84   :  { %542 = vmatpush1.bf16.msra.mxu0 %v1385_v16  ;;  %v1461_v63 = vld [vmem:[%s2112_s2 + $0x1a8] ss:$16 sps:$4 sm:$0xff]   ;;  %v1468_v0 = vld [vmem:[%s2116_s6 + $0x40] sm:$0xff]   ;;  %v1462_v1 = vld [vmem:[%s2112_s2 + $0x1cc] ss:$16 sps:$4 sm:$0xff]   ;;  %vm768_vm3 = vcmask 130048  }
  0x85   :  { %543 = vmatprep.subr.bf16.mxu0 %v1386_v17  ;;  %585 = vmatpush1.bf16.msra.mxu1 %v1429_v31  ;;  %v1464_v3 = vld [vmem:[%s2112_s2 + $0x1c8] ss:$16 sps:$4 sm:$0xff]   ;;  %v1465_v4 = vld [vmem:[%s2112_s2 + $0x1ec] ss:$16 sps:$4 sm:$0xff]   ;;  %v1449_v5 = vld [vmem:[%s2111_s1] sm:$0xff]   ;;  %vm1122_vm4 = vcmask 261120  }
  0x86   :  { %586 = vmatprep.subr.bf16.mxu1 %v1431_v32  ;;  %v1469_v6 = vld [vmem:[%s2116_s6] sm:$0xff]   ;;  %v1467_v7 = vld [vmem:[%s2112_s2 + $0x1e8] ss:$16 sps:$4 sm:$0xff]   ;;  %v1473_v11 = vld [vmem:[%s2116_s6 + $0x10] sm:$0xff]  }
  0x87   :  { %v1470_v8 = vld [vmem:[%s2116_s6 + $0x48] sm:$0xff]   ;;  %v1474_v12 = vld [vmem:[%s2116_s6 + $0x58] sm:$0xff]   ;;  %v1476_v14 = vld [vmem:[%s2116_s6 + $0x60] sm:$0xff]  }
  0x88   :  { %544 = vmatpush1.bf16.msra.mxu0 %v1388_v20  ;;  %v1471_v9 = vld [vmem:[%s2116_s6 + $0x8] sm:$0xff]   ;;  %v1475_v13 = vld [vmem:[%s2116_s6 + $0x18] sm:$0xff]   ;;  %v1477_v15 = vld [vmem:[%s2116_s6 + $0x20] sm:$0xff]  }
  0x89   :  { %545 = vmatprep.subr.bf16.mxu0 %v1389_v21  ;;  %587 = vmatpush1.bf16.msra.mxu1 %v1435_v35  ;;  %v1478_v16 = vld [vmem:[%s2116_s6 + $0x68] sm:$0xff]   ;;  %v1480_v18 = vld [vmem:[%s2116_s6 + $0x70] sm:$0xff]   ;;  %v1482_v20 = vld [vmem:[%s2116_s6 + $0x78] sm:$0xff]  }
  0x8a   :  { %588 = vmatprep.subr.bf16.mxu1 %v1440_v36  ;;  %v1479_v17 = vld [vmem:[%s2116_s6 + $0x28] sm:$0xff]   ;;  %v1481_v19 = vld [vmem:[%s2116_s6 + $0x30] sm:$0xff]   ;;  %v1483_v21 = vld [vmem:[%s2116_s6 + $0x38] sm:$0xff]  }
  0x8b   :  { %v1484_v22 = vld [vmem:[#allocation6] sm:$0xff]   ;;  %v179_v27 = vld [vmem:[%s2113_s3] sm:$0xf] }
  0x8c   :  { %546 = vmatpush1.bf16.msra.mxu0 %v1391_v24  ;;  %v1485_v23 = vld [vmem:[%s2116_s6 + $0xc0] sm:$0xff]   ;;  %v181_v24 = vlaneseq }
  0x8d   :  { %547 = vmatprep.subr.bf16.mxu0 %v1392_v25  ;;  %589 = vmatpush1.bf16.msra.mxu1 %v1442_v39 }
  0x8e   :  { %590 = vmatprep.subr.bf16.mxu1 %v1443_v40  ;;  %v182_v25 = vshrl.u32 %v181_v24, 7  ;;  %v1500_v24 = vld [vmem:[%s2116_s6 + $0xb8] sm:$0xff]  }
  0x90   :  { %548 = vmatpush1.bf16.msra.mxu0 %v1394_v28  ;;  %v183_v26 = vsub.s32 0, %v182_v25  ;;  %v187_v28 = vsub.s32 1, %v182_v25 }
  0x91   :  { %549 = vmatprep.subr.bf16.mxu0 %v1397_v29  ;;  %591 = vmatpush1.bf16.msra.mxu1 %v1445_v43  ;;  %v1245_v43 = vld [vmem:[#allocation4] ss:$0 sm:$0xff] }
  0x92   :  { %592 = vmatprep.subr.bf16.mxu1 %v1446_v44  ;;  %v184_v29 = vrot.slane %v179_v27, %v183_v26  ;;  %v188_v30 = vrot.slane %v179_v27, %v187_v28  ;;  %v191_v44 = vsub.s32 2, %v182_v25  ;;  %v1502_v26 = vld [vmem:[#allocation9 + $0x8] sm:$0xff]  }
  0x94   :  { %550 = vmatpush1.bf16.msra.mxu0 %v1400_v33 }
  0x95   :  { %551 = vmatprep.subr.bf16.mxu0 %v1403_v34  ;;  %593 = vmatpush1.bf16.msra.mxu1 %v1448_v47 }
  0x96   :  { %594 = vmatprep.subr.bf16.mxu1 %v1450_v49 }
  0x98   :  { %552 = vmatpush1.bf16.msra.mxu0 %v1406_v37 }
  0x99   :  { %553 = vmatprep.subr.bf16.mxu0 %v1409_v38  ;;  %595 = vmatpush1.bf16.msra.mxu1 %v1452_v52  ;;  %v192_v52 = vrot.slane %v179_v27, %v191_v44 }
  0x9a   :  { %596 = vmatprep.subr.bf16.mxu1 %v1453_v54 }
  0x9c   :  { %554 = vmatpush1.bf16.msra.mxu0 %v1412_v41 }
  0x9d   :  { %555 = vmatprep.subr.bf16.mxu0 %v1415_v42  ;;  %597 = vmatpush1.bf16.msra.mxu1 %v1455_v57 }
  0x9e   :  { %598 = vmatprep.subr.bf16.mxu1 %v1456_v58 }
  0xa0   :  { %556 = vmatpush1.bf16.msra.mxu0 %v1418_v45 }
  0xa1   :  { %557 = vmatprep.subr.bf16.mxu0 %v1421_v46  ;;  %599 = vmatpush1.bf16.msra.mxu1 %v1458_v60  ;;  %v195_v46 = vsub.s32 3, %v182_v25  ;;  %v1501_v25 = vld [vmem:[#allocation9] sm:$0xff]  }
  0xa2   :  { %600 = vmatprep.subr.bf16.mxu1 %v1459_v61 }
  0xa4   :  { %558 = vmatpush1.bf16.msra.mxu0 %v1424_v48 }
  0xa5   :  { %559 = vmatprep.subr.bf16.mxu0 %v1427_v50  ;;  %601 = vmatpush1.bf16.msra.mxu1 %v1461_v63  ;;  %v1487_v63 = vld [vmem:[%s2116_s6 + $0xc8] sm:$0xff]  }
  0xa6   :  { %602 = vmatprep.subr.bf16.mxu1 %v1462_v1 }
  0xa8   :  { %560 = vmatpush1.bf16.msra.mxu0 %v1430_v53 }
  0xa9   :  { %561 = vmatprep.subr.bf16.mxu0 %v1433_v55  ;;  %603 = vmatpush1.bf16.msra.mxu1 %v1464_v3  ;;  %v196_v55 = vrot.slane %v179_v27, %v195_v46 }
  0xaa   :  { %604 = vmatprep.subr.bf16.mxu1 %v1465_v4 }
  0xac   :  { %562 = vmatpush1.bf16.msra.mxu0 %v1436_v59  ;;  %v1486_v59 = vld [vmem:[%s2116_s6 + $0x80] sm:$0xff]  }
  0xad   :  { %1338 = vmatprep.subr.bf16.mxu0 %v1651_v2  ;;  %605 = vmatpush1.bf16.msra.mxu1 %v1467_v7 }
  0xae   :  { %1344 = vmatprep.subr.bf16.mxu1 %v1651_v2 }
  0xaf   :  { %564 = vmatmul.mubr.bf16.vlgmr.msra.gmra.mrb[0].mxu0 %v1437_v62 }
  0xb0   :  { %1339 = vmatpush3.bf16.msra.mxu0 %v646_v56  ;;  %1340 = vmatprep.mubr.msk.bf16.mxu0 %vm1652_vm2, %v1651_v2 }
  0xb1   :  { %1291 = vmatprep.subr.bf16.mxu0 %v1468_v0  ;;  %607 = vmatmul.mubr.bf16.vlgmr.msra.gmra.mrb[0].mxu1 %v1437_v62 }
  0xb2   :  { %1346 = vmatprep.mubr.msk.bf16.mxu1 %vm1652_vm2, %v1651_v2  ;;  %1345 = vmatpush3.bf16.msra.mxu1 %v1484_v22  ;;  %v1498_v22 = vld [vmem:[%s2116_s6 + $0xb0] sm:$0xff]  }
  0xb3   :  { %1313 = vmatprep.subr.bf16.mxu1 %v1485_v23  ;;  %v1499_v23 = vld [vmem:[%s2116_s6 + $0xf8] sm:$0xff]  }
  0xb7   :  { %1341 = vmatmul.mubr.msk.bf16.vlgmr.msra.gmra.mrb[4].mxu0 %vm640_vm1, %v1449_v5 }
  0xb8   :  { %1292 = vmatpush3.bf16.msra.mxu0 %v1469_v6 }
  0xb9   :  { %1293 = vmatprep.subr.bf16.mxu0 %v1470_v8  ;;  %v1488_v8 = vld [vmem:[%s2116_s6 + $0x88] sm:$0xff]  }
  0xbc   :  { %1294 = vmatpush3.bf16.msra.mxu0 %v1471_v9 }
  0xbd   :  { %1295 = vmatprep.subr.bf16.mxu0 %v1472_v10  ;;  %v1489_v10 = vld [vmem:[%s2116_s6 + $0xd0] sm:$0xff]  }
  0xc0   :  { %1296 = vmatpush3.bf16.msra.mxu0 %v1473_v11 }
  0xc1   :  { %1297 = vmatprep.subr.bf16.mxu0 %v1474_v12 }
  0xc4   :  { %1298 = vmatpush3.bf16.msra.mxu0 %v1475_v13 }
  0xc5   :  { %1299 = vmatprep.subr.bf16.mxu0 %v1476_v14  ;;  %v1490_v14 = vld [vmem:[%s2116_s6 + $0x90] sm:$0xff]  }
  0xc8   :  { %1300 = vmatpush3.bf16.msra.mxu0 %v1477_v15  ;;  %v1491_v15 = vld [vmem:[%s2116_s6 + $0xd8] sm:$0xff]  }
  0xc9   :  { %1301 = vmatprep.subr.bf16.mxu0 %v1478_v16  ;;  %v1492_v16 = vld [vmem:[%s2116_s6 + $0x98] sm:$0xff]  }
  0xcc   :  { %1302 = vmatpush3.bf16.msra.mxu0 %v1479_v17  ;;  %v1493_v17 = vld [vmem:[%s2116_s6 + $0xe0] sm:$0xff]  }
  0xcd   :  { %1303 = vmatprep.subr.bf16.mxu0 %v1480_v18  ;;  %v1494_v18 = vld [vmem:[%s2116_s6 + $0xa0] sm:$0xff]  }
  0xd0   :  { %1304 = vmatpush3.bf16.msra.mxu0 %v1481_v19  ;;  %v1495_v19 = vld [vmem:[%s2116_s6 + $0xe8] sm:$0xff]  }
  0xd1   :  { %1305 = vmatprep.subr.bf16.mxu0 %v1482_v20  ;;  %v1496_v20 = vld [vmem:[%s2116_s6 + $0xa8] sm:$0xff]  }
  0xd4   :  { %1306 = vmatpush3.bf16.msra.mxu0 %v1483_v21  ;;  %v1497_v21 = vld [vmem:[%s2116_s6 + $0xf0] sm:$0xff]  }
  0xd5   :  { %1350 = vmatprep.subr.bf16.mxu0 %v1651_v2 }
 0x182   :  { %v565_v31 = vpop.f32.mrb[0].mxu0 }
 0x183   :  { %v566_v32 = vadd.f32 %v565_v31, %v184_v29  ;;  %v567_v33 = vpop.f32.mrb[1].mxu0 }
 0x184   :  { %v568_v34 = vadd.f32 %v567_v33, %v188_v30  ;;  %v569_v35 = vpop.f32.mrb[2].mxu0  ;;  %v608_v58 = vpop.f32.mrb[0].mxu1 }
 0x185   :  { %v570_v36 = vadd.f32 %v569_v35, %v184_v29  ;;  %v571_v37 = vpop.f32.mrb[3].mxu0  ;;  %v617_v39 = vmax.f32 %v566_v32, 0.0  ;;  %v609_v60 = vadd.f32 %v608_v58, %v192_v52  ;;  %v610_v61 = vpop.f32.mrb[1].mxu1 }
 0x186   :  { %v572_v38 = vadd.f32 %v571_v37, %v188_v30  ;;  %v618_v41 = vmax.f32 %v568_v34, 0.0  ;;  %v611_v0 = vadd.f32 %v610_v61, %v196_v55  ;;  %v612_v1 = vpop.f32.mrb[2].mxu1 }
 0x187   :  { %v621_v40 = vmax.f32 %v570_v36, 0.0  ;;  %v619_v3 = vmax.f32 %v609_v60, 0.0  ;;  %v613_v4 = vadd.f32 %v612_v1, %v192_v52  ;;  %v614_v5 = vpop.f32.mrb[3].mxu1  ;;  %v1283_v52 = vld [vmem:[#allocation10] ss:$0 sm:$0xff] }
 0x188   :  { %v622_v42 = vmax.f32 %v572_v38, 0.0  ;;  %v620_v6 = vmax.f32 %v611_v0, 0.0  ;;  %v615_v7 = vadd.f32 %v614_v5, %v196_v55 }
 0x189   :  { %v691_v45 = vpack.c.bf16 %v621_v40, %v617_v39  ;;  %v623_v9 = vmax.f32 %v613_v4, 0.0 }
 0x18a   :  { %v692_v47 = vpack.c.bf16 %v622_v42, %v618_v41  ;;  %v682_v48 = vpop.f32.mrb[4].mxu0  ;;  %v624_v11 = vmax.f32 %v615_v7, 0.0 }
 0x18b   :  { %v683_v49 = vadd.f32 %v1245_v43, %v682_v48  ;;  %v1342_v50 = vpop.f32.mrb[5].mxu0  ;;  %v693_v12 = vpack.c.bf16 %v623_v9, %v619_v3 }
 0x18c   :  { %v685_v51 = vpop.f32.mrb[6].mxu0  ;;  %1037 = vmatprep.mubr.bf16.mxu0 %v692_v47  ;;  %v694_v13 = vpack.c.bf16 %v624_v11, %v620_v6 }
 0x18d   :  { %v686_v53 = vadd.f32 %v1245_v43, %v685_v51  ;;  %v1343_v54 = vpop.f32.mrb[7].mxu0  ;;  %1038 = vmatmul.mubr.bf16.vlgmr.msra.gmra.mrb[8].mxu0 %v691_v45  ;;  %v689_v56 = vmax.f32 %v683_v49, 0.0  ;;  %v1282_v43 = vld [vmem:[#allocation7] ss:$0 sm:$0xff] }
 0x18e   :  { %1354 = vmatprep.mubr.msk.bf16.mxu0 %vm1652_vm2, %v1651_v2  ;;  %1351 = vmatpush3.bf16.msra.mxu0 %v1501_v25 }
 0x18f   :  { %v690_v57 = vmax.f32 %v686_v53, 0.0  ;;  %1352 = vmatprep.subr.bf16.mxu0 %v1651_v2 }
 0x191   :  { %v759_v62 = vpack.c.bf16 %v690_v57, %v689_v56 }
 0x192   :  { %1353 = vmatpush3.bf16.msra.mxu0 %v1502_v26 }
 0x193   :  { %1347 = vmatmul.mubr.msk.bf16.vlgmr.msra.gmra.mrb[4].mxu1 %vm768_vm3, %v759_v62 }
 0x194   :  { %1314 = vmatpush3.bf16.msra.mxu1 %v1486_v59  ;;  %1078 = vmatprep.mubr.bf16.mxu1 %v694_v13 }
 0x195   :  { %1315 = vmatprep.subr.bf16.mxu1 %v1487_v63 }
 0x198   :  { %1316 = vmatpush3.bf16.msra.mxu1 %v1488_v8 }
 0x199   :  { %1317 = vmatprep.subr.bf16.mxu1 %v1489_v10 }
 0x19c   :  { %1318 = vmatpush3.bf16.msra.mxu1 %v1490_v14 }
 0x19d   :  { %1319 = vmatprep.subr.bf16.mxu1 %v1491_v15 }
 0x1a0   :  { %1320 = vmatpush3.bf16.msra.mxu1 %v1492_v16 }
 0x1a1   :  { %1321 = vmatprep.subr.bf16.mxu1 %v1493_v17 }
 0x1a4   :  { %1322 = vmatpush3.bf16.msra.mxu1 %v1494_v18 }
 0x1a5   :  { %1323 = vmatprep.subr.bf16.mxu1 %v1495_v19 }
 0x1a8   :  { %1324 = vmatpush3.bf16.msra.mxu1 %v1496_v20 }
 0x1a9   :  { %1325 = vmatprep.subr.bf16.mxu1 %v1497_v21 }
 0x1ac   :  { %1326 = vmatpush3.bf16.msra.mxu1 %v1498_v22 }
 0x1ad   :  { %1327 = vmatprep.subr.bf16.mxu1 %v1499_v23 }
 0x1b0   :  { %1328 = vmatpush3.bf16.msra.mxu1 %v1500_v24 }
 0x1b3   :  { %1079 = vmatmul.mubr.bf16.vlgmr.msra.gmra.mrb[8].mxu1 %v693_v12 }
 0x260   :  { %v1307_v27 = vpop.f32.mrb[8].mxu0 }
 0x261   :  { %v1308_v28 = vpop.f32.mrb[9].mxu0 }
 0x262   :  { %v1309_v29 = vadd.f32 %v1308_v28, %v1307_v27  ;;  %v1310_v30 = vpop.f32.mrb[10].mxu0 }
 0x263   :  { %v1311_v31 = vpop.f32.mrb[11].mxu0 }
 0x264   :  { %v1312_v32 = vadd.f32 %v1311_v31, %v1310_v30 }
 0x266   :  { %v806_v33 = vpop.f32.mrb[4].mxu1 }
 0x267   :  { %v1040_v34 = vadd.f32 %v1309_v29, %v806_v33  ;;  %v1348_v35 = vpop.f32.mrb[5].mxu1 }
 0x268   :  { %v809_v36 = vpop.f32.mrb[6].mxu1 }
 0x269   :  { %v1043_v37 = vadd.f32 %v1312_v32, %v809_v36  ;;  %v1349_v38 = vpop.f32.mrb[7].mxu1 }
 0x286   :  { %v1329_v39 = vpop.f32.mrb[8].mxu1 }
 0x287   :  { %v1330_v40 = vpop.f32.mrb[9].mxu1 }
 0x288   :  { %v1331_v41 = vadd.f32 %v1330_v40, %v1329_v39  ;;  %v1332_v42 = vpop.f32.mrb[10].mxu1 }
 0x289   :  { %v1333_v2 = vpop.f32.mrb[11].mxu1 }
 0x28a   :  { %v1081_v44 = vadd.f32 %v1331_v41, %v1040_v34  ;;  %v1334_v45 = vadd.f32 %v1333_v2, %v1332_v42 }
 0x28c   :  { %v1094_v46 = vadd.f32 %v1282_v43, %v1081_v44  ;;  %v1084_v47 = vadd.f32 %v1334_v45, %v1043_v37 }
 0x28e   :  { %v1095_v48 = vadd.f32 %v1282_v43, %v1084_v47  ;;  %v1096_v49 = vmax.f32 %v1094_v46, 0.0 }
 0x290   :  { %v1097_v50 = vmax.f32 %v1095_v48, 0.0 }
 0x292   :  { %v1098_v51 = vpack.c.bf16 %v1097_v50, %v1096_v49 }
 0x294   :  { %1355 = vmatmul.mubr.msk.bf16.vlgmr.msra.gmra.mrb[12].mxu0 %vm1122_vm4, %v1098_v51 }
 0x367   :  { %v1160_v53 = vpop.f32.mrb[12].mxu0 }
 0x368   :  { %v1161_v54 = vadd.f32 %v1283_v52, %v1160_v53  ;;  %v1356_v55 = vpop.f32.mrb[13].mxu0 }
 0x369   :  { %v1163_v56 = vpop.f32.mrb[14].mxu0 }
 0x36a   :  { %v1167_v57 = vmax.f32 %v1161_v54, 0.0  ;;  %v1164_v58 = vadd.f32 %v1283_v52, %v1163_v56  ;;  %v1357_v59 = vpop.f32.mrb[15].mxu0 }
 0x36c   :  { %1169 = vst.msk [vmem:[%s2121_s11] sm:$0xff] %vm1122_vm4, %v1167_v57  ;;  %v1168_v60 = vmax.f32 %v1164_v58, 0.0 }
 0x36e   :  { %1170 = vst.msk [vmem:[%s2121_s11 + $0x8] sm:$0xff] %vm1122_vm4, %v1168_v60 }
 0x36f   :  { %1175 = vsyncpa [#allocation3], 1 }
 0x370   :  { %1176 = vsyncpa [#allocation5], 1 }
 0x371   :  { %1177 = vsyncpa [#allocation8], 1 }
 0x372   :  { %1178 = vsyncpa [#allocation11], 1 }

</bundles_post_ra>
